<compile_context>
chip_gen: v6e
topology: v6e:2x2x1
jax: 0.10.0
libtpu: 0.0.40
codegen_flags: <defaults>
</compile_context>

<pallas_src>
import math

import jax
import jax.numpy as jnp
from jax.experimental import pallas as pl
from jax.experimental.pallas import tpu as pltpu


# ---------------------------------------------------------------------------
# Block-size heuristics
# ---------------------------------------------------------------------------

def _per_block_budget():
    """Generation-aware per-block byte budget.

    The pipeline holds roughly 2x(in+out) = 4 blocks plus tiny per-channel
    operands; 4 x 4 MiB = 16 MiB stays well under the 32 MiB scoped limit we
    request below and well under v7x's 64 MiB physical VMEM per TensorCore.
    """
    try:
        phys = int(pltpu.get_tpu_info().vmem_capacity_bytes)
    except Exception:
        phys = 64 << 20  # assume the smallest generation (v7x per-TC) if unknown
    return max(1 << 20, min(4 << 20, phys // 16))


def _block_sizes_3d(N, C, HW, itemsize, budget):
    """Pick (Nt, Ct, Wt) for x viewed as (N, C, HW).

    Guarantees: Ct is a multiple of the dtype's native sublane tile (or == C),
    Wt is a multiple of 128 (or == HW), the block never exceeds `budget` when
    the dims are splittable, and the grid has >= 2 blocks whenever possible.
    """
    align = max(8, 32 // itemsize)      # sublane tile: 8 f32, 16 bf16, 32 int8/fp8

    def largest_lane_tile(limit_elems):
        if HW % 128 != 0:
            return HW                   # indivisible: take full extent
        t = max(128, min(HW, (limit_elems // 128) * 128))
        while HW % t != 0:
            t -= 128
        return t

    # Lane (last) dim: reserve `align` sublane rows up front so the block can
    # never exceed the budget when HW is 128-splittable.
    Wt = largest_lane_tile(budget // (align * itemsize))

    # Sublane (channel) dim, aligned to the packed-tile height for the dtype.
    rows = budget // max(1, Wt * itemsize)
    if C <= rows or C % align != 0:
        Ct = C
    else:
        Ct = max(align, (rows // align) * align)
        while C % Ct != 0:
            Ct -= align

    # Safety clamp: an indivisible C forced Ct == C -> trade lane width back.
    if Ct * Wt * itemsize > budget:
        Wt = largest_lane_tile(budget // max(1, Ct * itemsize))

    # Batch dim: pack whole (Ct, Wt) planes up to the budget.
    plane = Ct * Wt * itemsize
    Nt = max(1, min(N, budget // max(1, plane)))
    while N % Nt != 0:
        Nt -= 1

    # Guarantee >= 2 blocks so "parallel" axes can shard across both v7x cores.
    if (N // Nt) * (C // Ct) * (HW // Wt) == 1:
        if N >= 2:
            Nt = N // 2 if N % 2 == 0 else 1
        elif HW % 256 == 0:
            Wt = HW // 2
        elif C % (2 * align) == 0:
            Ct = C // 2
    return Nt, Ct, Wt


def _block_sizes_2d(N, M, itemsize, budget):
    """Pick (Nt, Mt) for the lane-dense small-feature-map path, x as (N, M)."""
    if M % 128 == 0:
        Mt = max(128, min(M, (budget // max(8, N) // itemsize) // 128 * 128))
        while M % Mt != 0:
            Mt -= 128
    else:
        Mt = M
    Nt = N                               # full batch (== full dim -> always legal)
    if Nt * Mt * itemsize > budget and N % 8 == 0:
        Nt = max(8, (budget // max(1, Mt * itemsize)) // 8 * 8)
        while N % Nt != 0:
            Nt -= 8
    # Guarantee >= 2 blocks for the two v7x TensorCores.
    if (N // Nt) * (M // Mt) == 1:
        if M % 256 == 0:
            Mt = M // 2
        elif N >= 2 and N % 2 == 0 and (N // 2) % 8 == 0:
            Nt = N // 2
    return Nt, Mt


# ---------------------------------------------------------------------------
# Kernels
# ---------------------------------------------------------------------------

def _affine_nchw_kernel(w_ref, b_ref, x_ref, o_ref):
    """Main path: per-channel affine on an (Nt, Ct, Wt) block.

    w_ref/b_ref: (Ct, 1) in the compute dtype; x_ref/o_ref: (Nt, Ct, Wt).
    """
    w = w_ref[...]
    b = b_ref[...]
    x = x_ref[...]
    if x.dtype != w.dtype:               # f32 compute path for f32 / exotic dtypes
        x = x.astype(w.dtype)
    o_ref[...] = (x * w[None, :, :] + b[None, :, :]).astype(o_ref.dtype)


def _affine_flat_kernel(w_ref, b_ref, x_ref, o_ref):
    """Small-HW path: per-element affine on an (Nt, Mt) lane-dense block.

    w_ref/b_ref: (1, Mt) expanded per element; x_ref/o_ref: (Nt, Mt).
    """
    w = w_ref[...]
    b = b_ref[...]
    x = x_ref[...]
    if x.dtype != w.dtype:
        x = x.astype(w.dtype)
    o_ref[...] = (x * w + b).astype(o_ref.dtype)


# ---------------------------------------------------------------------------
# Wrapper
# ---------------------------------------------------------------------------

def adaptive_modulate_pallas(x, g_arch, w_weight, w_bias, b_weight, b_bias):
    """out = x * (W_w @ g + b_w + 1) + (W_b @ g + b_b), broadcast per channel."""
    N, C, H, W = x.shape
    HW = H * W
    itemsize = jnp.dtype(x.dtype).itemsize

    # Tiny per-channel affine params: one small XLA matvec (O(C*L) flops,
    # microseconds) so the Pallas kernel is a pure 3-operand bandwidth stream.
    g = g_arch.reshape(-1).astype(jnp.float32)
    w = w_weight.astype(jnp.float32) @ g + w_bias.astype(jnp.float32) + 1.0   # (C,)
    b = b_weight.astype(jnp.float32) @ g + b_bias.astype(jnp.float32)         # (C,)

    # bf16/f16 inputs: do the FMA in the input dtype (no full-block f32 temp);
    # everything else computes in f32 (exact match to the PyTorch reference).
    if x.dtype == jnp.bfloat16 or x.dtype == jnp.float16:
        compute_dtype = x.dtype
    else:
        compute_dtype = jnp.float32
    w = w.astype(compute_dtype)
    b = b.astype(compute_dtype)

    budget = _per_block_budget()
    params = pltpu.CompilerParams(
        dimension_semantics=None,                 # filled per-path below
        vmem_limit_bytes=32 << 20)                # explicit: covers v5e's 16 MiB default

    if HW >= 128:
        # --- Main path: (N, C, HW), lane-dense spatial dim. -----------------
        x3 = x.reshape(N, C, HW)
        w2 = w.reshape(C, 1)
        b2 = b.reshape(C, 1)
        Nt, Ct, Wt = _block_sizes_3d(N, C, HW, itemsize, budget)
        grid = (N // Nt, C // Ct, HW // Wt)

        cost = pl.CostEstimate(
            flops=2 * N * C * HW,
            transcendentals=0,
            bytes_accessed=2 * x3.size * itemsize
            + 2 * C * jnp.dtype(compute_dtype).itemsize)

        out = pl.pallas_call(
            _affine_nchw_kernel,
            out_shape=jax.ShapeDtypeStruct((N, C, HW), x.dtype),
            grid=grid,
            in_specs=[
                pl.BlockSpec((Ct, 1), lambda ni, ci, si: (ci, 0)),        # weight
                pl.BlockSpec((Ct, 1), lambda ni, ci, si: (ci, 0)),        # bias
                pl.BlockSpec((Nt, Ct, Wt), lambda ni, ci, si: (ni, ci, si)),
            ],
            out_specs=pl.BlockSpec((Nt, Ct, Wt), lambda ni, ci, si: (ni, ci, si)),
            compiler_params=pltpu.CompilerParams(
                dimension_semantics=("parallel", "parallel", "parallel"),
                vmem_limit_bytes=32 << 20),
            cost_estimate=cost,
        )(w2, b2, x3)
        return out.reshape(N, C, H, W)

    # --- Small feature maps (HW < 128): fold C and HW into one lane-dense ---
    # last dim so stores are unmasked full-lane vst instead of masked vst.msk.
    M = C * HW
    x2 = x.reshape(N, M)
    w2 = jnp.repeat(w, HW).reshape(1, M)      # per-element expansion, O(C*HW)
    b2 = jnp.repeat(b, HW).reshape(1, M)
    Nt, Mt = _block_sizes_2d(N, M, itemsize, budget)
    grid = (N // Nt, M // Mt)

    cost = pl.CostEstimate(
        flops=2 * N * M,
        transcendentals=0,
        bytes_accessed=2 * x2.size * itemsize
        + 2 * M * jnp.dtype(compute_dtype).itemsize)

    out = pl.pallas_call(
        _affine_flat_kernel,
        out_shape=jax.ShapeDtypeStruct((N, M), x.dtype),
        grid=grid,
        in_specs=[
            pl.BlockSpec((1, Mt), lambda ni, mi: (0, mi)),                # weight
            pl.BlockSpec((1, Mt), lambda ni, mi: (0, mi)),                # bias
            pl.BlockSpec((Nt, Mt), lambda ni, mi: (ni, mi)),
        ],
        out_specs=pl.BlockSpec((Nt, Mt), lambda ni, mi: (ni, mi)),
        compiler_params=pltpu.CompilerParams(
            dimension_semantics=("parallel", "parallel"),
            vmem_limit_bytes=32 << 20),
        cost_estimate=cost,
    )(w2, b2, x2)
    return out.reshape(N, C, H, W)


# ---------------------------------------------------------------------------
# Module-style wrapper + reference + demo
# ---------------------------------------------------------------------------

class AdaptiveModulate:
    """JAX/Pallas equivalent of the PyTorch AdaptiveModulate module."""

    def __init__(self, num_features, g_arch_len, *, key):
        k1, k2, k3, k4 = jax.random.split(key, 4)
        lim = 1.0 / math.sqrt(g_arch_len)   # nn.Linear default init range
        self.w_weight = jax.random.uniform(k1, (num_features, g_arch_len),
                                           jnp.float32, -lim, lim)
        self.w_bias = jax.random.uniform(k2, (num_features,), jnp.float32, -lim, lim)
        self.b_weight = jax.random.uniform(k3, (num_features, g_arch_len),
                                           jnp.float32, -lim, lim)
        self.b_bias = jax.random.uniform(k4, (num_features,), jnp.float32, -lim, lim)

    def __call__(self, x, g_arch):
        assert x.ndim == 4
        return adaptive_modulate_pallas(
            x, g_arch, self.w_weight, self.w_bias, self.b_weight, self.b_bias)


def _reference(x, g_arch, w_weight, w_bias, b_weight, b_bias):
    """Pure-JAX reference mirroring the PyTorch forward."""
    w = g_arch @ w_weight.T + w_bias + 1.0
    b = g_arch @ b_weight.T + b_bias
    return x * w[None, :, None, None] + b[None, :, None, None]


if __name__ == "__main__":
    key = jax.random.PRNGKey(0)
    kx, kg, kp, kx2 = jax.random.split(key, 4)

    N, C, H, W, L = 2, 4, 16, 16, 32
    x = jax.random.normal(kx, (N, C, H, W), dtype=jnp.float32)
    g_arch = jax.random.normal(kg, (L,), dtype=jnp.float32)

    mod = AdaptiveModulate(C, L, key=kp)

    # Main (HW >= 128) path.
    y = jax.block_until_ready(mod(x, g_arch))
    assert y.shape == (N, C, H, W), y.shape
    y_ref = _reference(x, g_arch, mod.w_weight, mod.w_bias, mod.b_weight, mod.b_bias)
    err = float(jnp.max(jnp.abs(y - y_ref)))
    assert err < 1e-4, err

    # Small-feature-map (HW < 128) lane-dense path.
    x_small = jax.random.normal(kx2, (N, C, 4, 4), dtype=jnp.float32)
    y_small = jax.block_until_ready(mod(x_small, g_arch))
    y_small_ref = _reference(x_small, g_arch, mod.w_weight, mod.w_bias,
                             mod.b_weight, mod.b_bias)
    err_small = float(jnp.max(jnp.abs(y_small - y_small_ref)))
    assert err_small < 1e-4, err_small

    print("KERNEL_OK")
</pallas_src>

<mosaic_0001>
module attributes {stable_mosaic.version = 11 : i64} {
  func.func @_affine_nchw_kernel(%arg0: i32, %arg1: i32, %arg2: i32, %arg3: memref<4x1xf32, #tpu.memory_space<vmem>>, %arg4: memref<4x1xf32, #tpu.memory_space<vmem>>, %arg5: memref<1x4x256xf32, #tpu.memory_space<vmem>>, %arg6: memref<1x4x256xf32, #tpu.memory_space<vmem>>) attributes {dimension_semantics = [#tpu.dimension_semantics<parallel>, #tpu.dimension_semantics<parallel>, #tpu.dimension_semantics<parallel>], iteration_bounds = array<i64: 2, 1, 1>, scalar_prefetch = 0 : i64, scratch_operands = 0 : i64, tpu.core_type = #tpu.core_type<tc>, window_params = [{transform_indices = @transform_0, window_bounds = array<i64: 4, 1>}, {transform_indices = @transform_1, window_bounds = array<i64: 4, 1>}, {transform_indices = @transform_2, window_bounds = array<i64: 1, 4, 256>}, {transform_indices = @transform_3, window_bounds = array<i64: 1, 4, 256>}]} {
    %c0 = arith.constant 0 : index
    %c0_0 = arith.constant 0 : index
    %0 = vector.load %arg3[%c0, %c0_0] : memref<4x1xf32, #tpu.memory_space<vmem>>, vector<4x1xf32>
    %c0_1 = arith.constant 0 : index
    %c0_2 = arith.constant 0 : index
    %1 = vector.load %arg4[%c0_1, %c0_2] : memref<4x1xf32, #tpu.memory_space<vmem>>, vector<4x1xf32>
    %c0_3 = arith.constant 0 : index
    %c0_4 = arith.constant 0 : index
    %c0_5 = arith.constant 0 : index
    %2 = vector.load %arg5[%c0_3, %c0_4, %c0_5] : memref<1x4x256xf32, #tpu.memory_space<vmem>>, vector<1x4x256xf32>
    %3 = vector.shape_cast %0 : vector<4x1xf32> to vector<1x4x1xf32>
    %4 = vector.broadcast %3 : vector<1x4x1xf32> to vector<1x4x256xf32>
    %5 = arith.mulf %2, %4 : vector<1x4x256xf32>
    %6 = vector.shape_cast %1 : vector<4x1xf32> to vector<1x4x1xf32>
    %7 = vector.broadcast %6 : vector<1x4x1xf32> to vector<1x4x256xf32>
    %8 = arith.addf %5, %7 : vector<1x4x256xf32>
    %c0_6 = arith.constant 0 : index
    %c0_7 = arith.constant 0 : index
    %c0_8 = arith.constant 0 : index
    %9 = vector.load %arg6[%c0_6, %c0_7, %c0_8] : memref<1x4x256xf32, #tpu.memory_space<vmem>>, vector<1x4x256xf32>
    tpu.vector_store %arg6[%c0_6, %c0_7, %c0_8], %8 {strides = array<i32>} : memref<1x4x256xf32, #tpu.memory_space<vmem>>, vector<1x4x256xf32>,
    return
  }
  func.func @transform_0(%arg0: i32, %arg1: i32, %arg2: i32) -> (i32, i32) {
    %c0_i32 = arith.constant 0 : i32
    %c0_i32_0 = arith.constant 0 : i32
    return %arg1, %c0_i32 : i32, i32
  }
  func.func @transform_1(%arg0: i32, %arg1: i32, %arg2: i32) -> (i32, i32) {
    %c0_i32 = arith.constant 0 : i32
    %c0_i32_0 = arith.constant 0 : i32
    return %arg1, %c0_i32 : i32, i32
  }
  func.func @transform_2(%arg0: i32, %arg1: i32, %arg2: i32) -> (i32, i32, i32) {
    %c0_i32 = arith.constant 0 : i32
    return %arg0, %arg1, %arg2 : i32, i32, i32
  }
  func.func @transform_3(%arg0: i32, %arg1: i32, %arg2: i32) -> (i32, i32, i32) {
    %c0_i32 = arith.constant 0 : i32
    return %arg0, %arg1, %arg2 : i32, i32, i32
  }
}

</mosaic_0001>

<bundles_post_ra>
// kernel: tpu_custom_call.1
= control target key start
LH: loop header
LB: loop body
LE: loop exit
PB: predicated region body
PF: predicated region fallthrough
CT: control target
= control target key end

     0   :  { %8 = vsyncpa [#allocation3], 0  ;;  %s782_s0 = inlined_call_operand.vmem [shape: f32[4,1], index: 0, kind: input, shape index: {}]   ;;  %s783_s1 = inlined_call_operand.vmem [shape: f32[4,1], index: 1, kind: input, shape index: {}]   ;;  %s784_s2 = inlined_call_operand.hbm [shape: f32[2,4,256], index: 2, kind: input, shape index: {}]   ;;  %s785_s3 = inlined_call_operand.hbm [shape: f32[2,4,256], index: 3, kind: output, shape index: {}]  }
   0x1   :  { %10 = vsyncpa [#allocation3 + $0x1], 0 }
   0x2   :  { %11 = vsyncpa [#allocation4], 0 }
   0x3   :  { %13 = vsyncpa [#allocation4 + $0x1], 0  ;;  %s642_s12 = smov 0   ;;  %s644_s13 = smov 0  }
   0x4   :  { %s646_s14 = smov 0   ;;  %s648_s15 = smov 0  }
   0x5   :  { %s650_s16 = smov 0   ;;  %s652_s17 = smov 0  }
   0x6 LB: > { %s424_s18 = sadd.s32 4294967295, %s616_s17   ;;  %s425_s19 = sadd.s32 4294967294, %s616_s17   ;;  %s616_s17 = sphi %s652_s17, %s19_s17   ;;  %s612_s16 = sphi %s650_s16, %s797_s16   ;;  %s608_s15 = sphi %s648_s15, %s796_s15   ;;  %s604_s14 = sphi %s646_s14, %s795_s14   ;;  %s600_s13 = sphi %s644_s13, %s794_s13   ;;  %s596_s12 = sphi %s642_s12, %s793_s12  }
   0x7   : > { %s38_s20 = sadd.s32 1, %s612_s16  ;;  %s101_s21 = sadd.s32 1, %s604_s14 }
   0x8   : > { %p40_p0 = scmp.ge.s32.totalorder %s38_s20, 2  ;;  %p108_p1 = scmp.ne.s32.totalorder %s604_s14, %s600_s13 }
   0x9   : > { %p109_p2 = scmp.eq.s32.totalorder %s616_s17, 0  ;;  %p114_p3 = scmp.ne.s32.totalorder %s600_s13, %s596_s12 }
   0xa   : > { %s799_s20 = smov (%p40_p0, %s38_s20), 0  ;;  %p115_p5 = scmp.eq.s32.totalorder %s424_s18, 0 }
   0xb   : > { %p683_p4 = por %p109_p2, %p108_p1  ;;  %s94_s23 = ssub.s32 %s612_s16, %s799_s20 }
   0xc   : > { %p142_p6 = scmp.eq.s32.totalorder %s424_s18, 1  ;;  %p99_p7 = scmp.eq.s32.totalorder %s94_s23, 0 }
   0xd   : > { %p689_p8 = por %p115_p5, %p114_p3  ;;  %p148_p10 = scmp.eq.s32.totalorder %s425_s19, 1 }
   0xe   : > { %p693_p9 = por %p142_p6, %p108_p1  ;;  %p455_p13 = scmp.lt.s32.totalorder %s616_s17, 2 }
   0xf   : > { %s698_s26 = scalar_select %p99_p7, %s604_s14, %s101_s21  }
  0x10   : > { %p700_p11 = por %p148_p10, %p114_p3  ;;  %s182_s28 = sand.u32 1, %s604_s14  }
  0x11   : > { %s430_s29 = sshll.u32 %s182_s28, 3  ;;  %s441_s30 = sshll.u32 %s612_s16, 7 }
  0x12   : > { %s789_s27 = scalar_select %p700_p11, 1, 0 }
  0x13   : > { %s196_s6 = scalar_lea.hbm %s784_s2, %s441_s30  ;;  %s186_s7 = scalar_lea.vmem [#allocation2], %s430_s29 }
  0x14   : > { %s198_s8 = sshll.u32 %s186_s7, 4  ;;  %p713_p0 = pnand %p455_p13, %p683_p4  ;;  %s199_s8 = int_to_ptr.vmem [resolvable:$true] %s198_s8 }
  0x15   : > { %p433_p1 = scmp.ge.s32.totalorder %s616_s17, 1  ;;  %p203_p2 = scmp.lt.s32.totalorder %s616_s17, 3 }
  0x16   : > { %s183_s10 = scalar_lea.sflag [#allocation3], %s182_s28  ;;  %p510_p3 = pneg %p713_p0 }
  0x17   : > { %s521_s11 = scalar_lea.vmem %s199_s8, 128  ;;  %s618_s18 = smov [#allocation2]  }
  0x18   : > { %p522_p5 = scmp.ne.s32.totalorder %s199_s8, %s521_s11  ;;  %s526_s19 = sshll.u32 %s618_s18, 4  ;;  %s527_s19 = int_to_ptr.vmem [resolvable:$false] %s526_s19 }
  0x19   : > { %s528_s21 = scalar_lea.vmem %s527_s19, 256  ;;  %p529_p10 = scmp.lt.s32.totalorder %s199_s8, %s527_s19 }
  0x1a   : > { %p524_p6 = pnand %p522_p5, %p510_p3  ;;  %p530_p12 = scmp.lt.s32.totalorder %s528_s21, %s521_s11 }
  0x1c   : > { %p525_p7 = pneg %p524_p6  ;;  %p531_p4 = por %p530_p12, %p529_p10 }
  0x1e   : > { %p532_p13 = pnand %p531_p4, %p525_p7 }
  0x20   : > { %535 = shalt.err (!%p532_p13)
}
  0x21   : > { %450 = dma.hbm_to_vmem [thread:$0]  (!%p713_p0), %s196_s6, 128, %s199_s8, %s183_s10  }
  0x22   : > { %p204_p11 = pnand %p433_p1, %p203_p2 }
  0x23   : > { %s728_s22 = sand.u32 (!%p204_p11), 1, %s600_s13  }
  0x24   : > { %207 = sbr.rel (%p204_p11) target bundleno = 189 (0xbd), region = 32  ;;  %s434_s23 = sshll.u32 (!%p204_p11), %s728_s22, 3 }
  0x25   : > { %s210_s28 = scalar_lea.sflag (!%p204_p11), [#allocation3], %s728_s22  ;;  %s213_s29 = scalar_lea.vmem (!%p204_p11), [#allocation2], %s434_s23 }
  0x29   : > { %587 = dma.done.wait (%p689_p8), %s210_s28, 128  }
  0x2a   : > { %589 = vsyncadd (%p689_p8), %s210_s28, 4294967168  ;;  %v619_v0 = vmov 0   ;;  %v254_v1 = vld [vmem:[%s782_s0] sm:$0xf]  ;;  %v620_v3 = vmov 839922192   ;;  %v264_v5 = vlaneseq }
  0x2b   : > { %507 = vset.pattern.permute.xlu0 %v619_v0  ;;  %v255_v2 = vld [vmem:[%s783_s1] sm:$0xf]  ;;  %v262_v4 = vunpack.c.l.s4 %v620_v3  ;;  %s442_s24 = sshll.u32 %s608_s15, 7  ;;  %s243_s7 = scalar_lea.vmem [#allocation5], %s434_s23 }
  0x2c   : > { %259 = vperm.xlu0 %507, %v254_v1   ;;  %v265_v7 = vshrl.u32 %v264_v5, 7  ;;  %v256_v11 = vld [vmem:[%s213_s29] sm:$0xff]  ;;  %s303_s8 = sshll.u32 %s243_s7, 4  ;;  %s301_s11 = scalar_lea.hbm %s785_s3, %s442_s24  ;;  %s304_s8 = int_to_ptr.vmem [resolvable:$true] %s303_s8 }
  0x2d   : > { %v263_v6 = vunpack.c.0.s8 %v262_v4  ;;  %s285_s18 = scalar_lea.sflag [#allocation4], %s728_s22  ;;  %s536_s19 = scalar_lea.vmem %s304_s8, 128 }
  0x2e   : > { %p537_p8 = scmp.ne.s32.totalorder %s304_s8, %s536_s19  ;;  %s621_s21 = smov [#allocation5]  }
  0x2f   : > { %v266_v8 = vsub.s32 %v263_v6, %v265_v7  ;;  %s540_s28 = sshll.u32 %s621_s21, 4  ;;  %s541_s28 = int_to_ptr.vmem [resolvable:$false] %s540_s28 }
  0x30   : > { %272 = vperm.xlu0 %507, %v255_v2   ;;  %p538_p11 = pnand %p537_p8, %p693_p9  ;;  %s542_s15 = scalar_lea.vmem %s541_s28, 256 }
  0x31   : > { %p543_p0 = scmp.lt.s32.totalorder %s304_s8, %s541_s28  ;;  %p544_p1 = scmp.lt.s32.totalorder %s542_s15, %s536_s19 }
  0x32   : > { %p539_p12 = pneg %p538_p11 }
  0x33   : > { %p545_p2 = por %p544_p1, %p543_p0 }
  0x35   : > { %p546_p3 = pnand %p545_p2, %p539_p12 }
  0xa7   : > { %v260_v9 = vpop.permute.xlu0 %259 }
  0xa8   : > { %v267_v10 = vrot.slane %v260_v9, %v266_v8 }
  0xaa   : > { %v269_v13 = vmul.f32 %v267_v10, %v256_v11 }
  0xab   : > { %v273_v12 = vpop.permute.xlu0 %272 }
  0xac   : > { %v280_v14 = vrot.slane %v273_v12, %v266_v8 }
  0xae   : > { %v282_v15 = vadd.f32 %v280_v14, %v269_v13 }
  0xb0   : > { %283 = vst [vmem:[%s243_s7] sm:$0xff] %v282_v15 }
  0xb1   : > { %549 = shalt.err (!%p546_p3)
}
  0xb2   : > { %s550_s23 = scalar_lea.hbm %s301_s11, 128  ;;  %s554_s30 = scalar_lea.hbm %s785_s3, 256 }
  0xb3   : > { %p551_p5 = scmp.ne.s32.totalorder %s301_s11, %s550_s23  ;;  %p555_p10 = scmp.lt.s32.totalorder %s301_s11, %s785_s3 }
  0xb4   : > { %p556_p4 = scmp.lt.s32.totalorder %s554_s30, %s550_s23 }
  0xb5   : > { %p552_p6 = pnand %p551_p5, %p693_p9 }
  0xb6   : > { %p557_p13 = por %p556_p4, %p555_p10 }
  0xb7   : > { %p553_p7 = pneg %p552_p6 }
  0xb9   : > { %p558_p8 = pnand %p557_p13, %p553_p7 }
  0xbb   : > { %561 = shalt.err (!%p558_p8)
}
  0xbc   : > { %445 = dma.vmem_to_hbm [thread:$0]  (%p693_p9), %s304_s8, 128, %s301_s11, %s285_s18  }
  0xbd PF: > { %s315_s6 = sand.u32 1, %s596_s12   ;;  %p791_p11 = scmp.ne.s32.totalorder %s789_s27, 0 }
  0xbe   : > { %p792_p12 = scmp.ge.s32.totalorder %s616_s17, 2  ;;  %s316_s24 = scalar_lea.sflag [#allocation4], %s315_s6 }
  0xc0   : > { %p452_p0 = pnand %p792_p12, %p791_p11 }
  0xc2   : > { %p453_p1 = pneg %p452_p0 }
  0xc4   : > { %591 = dma.done.wait (%p453_p1), %s316_s24, 128  }
  0xc5   : > { %593 = vsyncadd (%p453_p1), %s316_s24, 4294967168  ;;  %s19_s17 = sadd.s32 1, %s616_s17   ;;  %s793_s12 = smov %s600_s13 }
  0xc6   : > { %p16_p2 = scmp.ge.s32.totalorder %s19_s17, 4   ;;  %s794_s13 = smov %s604_s14 }
  0xc7   : > { %s795_s14 = smov %s698_s26  ;;  %s796_s15 = smov %s612_s16 }
  0xc8   : > { %s797_s16 = smov %s799_s20  ;;  %18 = sbr.rel (!%p16_p2) target bundleno = 6 (0x6), region = 83 }
  0xcd   :  { %321 = vsyncpa [#allocation3], 1 }
  0xce   :  { %323 = vsyncpa [#allocation3 + $0x1], 1 }
  0xcf   :  { %324 = vsyncpa [#allocation4], 1 }
  0xd0   :  { %326 = vsyncpa [#allocation4 + $0x1], 1 }

</bundles_post_ra>
